<compile_context>
chip_gen: v5e
topology: v5e:2x2
jax: 0.10.0
libtpu: 0.0.40
codegen_flags: <defaults>
</compile_context>

<pallas_src>
import jax
import jax.numpy as jnp
from jax import lax
from jax.experimental import pallas as pl
from jax.experimental.pallas import tpu as pltpu


# dot_general dimension numbers.
_NN = (((1,), (0,)), ((), ()))   # standard   A(m,k) @ B(k,n)
_TN = (((0,), (0,)), ((), ()))   # transposed A(k,m)^T @ B(k,n)


def _round_up(x, m):
    return ((x + m - 1) // m) * m


def _device_vmem_limit_bytes():
    """Per-generation VMEM budget with ~20% headroom for compiler scratch.

    v5e/v6e have 128 MiB per TensorCore, v7x only 64 MiB; hard-coding 64 MiB
    starves v5e/v6e tiles and leaves no headroom on v7x.
    """
    cap = None
    try:
        cap = getattr(pltpu.get_tpu_info(), "vmem_capacity_bytes", None)
    except Exception:
        cap = None
    if not cap:
        cap = 64 * 1024 * 1024        # conservative fallback (v7x physical)
    return int(cap * 0.8)


def _tensorcores_per_chip():
    """v7x (and v4/v5p megacore) expose 2 TensorCores to one kernel; v5e/v6e
    have a single TensorCore per chip."""
    try:
        kind = jax.devices()[0].device_kind.lower().replace(" ", "")
        for tag in ("v7", "tpu7", "v4", "v5p"):
            if tag in kind:
                return 2
    except Exception:
        pass
    return 1


def _pick_batch_tile(batch, c_in, n_cores, cap=8):
    """Batch rows per grid step.

    * (bt * c_in) must be a multiple of 8 (sublane constraint of the
      (bt*C, ts) input block) unless the tile covers the whole batch.
    * On 2-TC chips prefer a tile count that is a multiple of the core count
      (balanced megacore); on single-TC chips just maximize bt.
    """
    cap = max(1, min(cap, batch))

    def ok(bt):
        return batch % bt == 0 and ((bt * c_in) % 8 == 0 or bt == batch)

    if n_cores > 1:
        for bt in range(cap, 0, -1):
            if ok(bt) and (batch // bt) % n_cores == 0:
                return bt
    for bt in range(cap, 0, -1):
        if ok(bt):
            return bt
    return batch


def _pick_s_tile(s, bt, c_in, vmem_limit_bytes, cap=16384):
    """Lane-aligned spatio-temporal tile.

    Sized so per-step streamed DMA (2 branches x double buffer) is a few MB —
    big enough to amortize the ~0.35us grid-step overhead, small enough to sit
    well inside the VMEM budget.  Prefers exact divisors of S (no tail);
    otherwise the tail is zero-padded host-side and masked in-kernel.
    """
    bytes_per_s = 2 * 2 * bt * c_in * 4          # 2 branches x 2 buffers x f32
    budget = int(0.4 * vmem_limit_bytes)
    cap = min(cap, max(128, (budget // bytes_per_s // 128) * 128))
    if s <= cap:
        return _round_up(s, 128)
    t = (cap // 128) * 128
    while t >= 128:
        if s % t == 0:
            return t                              # exact divisor: no masking
        t -= 128
    return (cap // 128) * 128                     # masked tail tile


def _make_ensemble_kernel(bt, c_in, inv_s, s_real, ts, mask_tail):
    def kernel(rgb_ref, dep_ref,
               w1r_ref, b1r_ref, w1d_ref, b1d_ref,
               w2r_ref, w2d_ref, b2_ref,
               pred_ref, feat_ref,
               acc_r, acc_d):
        si = pl.program_id(1)

        @pl.when(si == 0)
        def _init():
            acc_r[...] = jnp.zeros_like(acc_r)
            acc_d[...] = jnp.zeros_like(acc_d)

        if mask_tail:
            # S was zero-padded up to a multiple of ts.  relu(0 + b1) != 0,
            # so padded lanes must be zeroed before entering the pooled sum.
            rem = s_real - si * ts
            lane = lax.broadcasted_iota(jnp.int32, (1, ts), 1)
            valid = (lane < rem).astype(jnp.float32)           # (1, ts)
        else:
            valid = None

        col_id = lax.broadcasted_iota(jnp.int32, (1, bt), 1)   # 0..bt-1

        def accumulate(x_ref, w1t_ref, b1_ref, acc_ref):
            w1t = w1t_ref[...]                                 # (hidden, C) bf16
            b1 = b1_ref[...]                                   # (hidden, 1) f32
            parts = jnp.zeros(acc_ref.shape, jnp.float32)      # (hidden, bt)
            # bt <= 8 static unroll; each iteration's (hidden, ts) activation
            # tile is reduced to one column before the next matmul, keeping
            # live ranges bounded even at large ts.
            for b in range(bt):
                x = x_ref[pl.ds(b * c_in, c_in), :].astype(jnp.bfloat16)
                # 1x1x1 conv == channel matmul: bf16 MXU inputs, f32 accumulate
                # (avoids the emulated multi-pass f32 MXU path).
                h = lax.dot_general(w1t, x, _NN,
                                    preferred_element_type=jnp.float32)
                h = jnp.maximum(h + b1, 0.0)                   # (hidden, ts)
                if valid is not None:
                    h = h * valid                              # mask padded tail
                col = jnp.sum(h, axis=1, keepdims=True)        # (hidden, 1)
                # Place column b with a VPU broadcast instead of a 1-lane
                # masked VMEM read-modify-write.
                parts = parts + col * (col_id == b).astype(jnp.float32)
            acc_ref[...] += parts         # ONE lane-dense update / branch / step

        accumulate(rgb_ref, w1r_ref, b1r_ref, acc_r)
        accumulate(dep_ref, w1d_ref, b1d_ref, acc_d)

        @pl.when(si == pl.num_programs(1) - 1)
        def _finalize():
            f_r = acc_r[...] * inv_s                           # (hidden, bt)
            f_d = acc_d[...] * inv_s
            # Averaged feature: tiny in-register transpose (no hidden^2 eye).
            f_avg = 0.5 * (f_r + f_d)
            feat_ref[...] = jnp.transpose(f_avg, (1, 0)).astype(feat_ref.dtype)
            # Averaged prediction; the 0.5 is folded into w2*/b2 host-side.
            pred = (lax.dot_general(f_r, w2r_ref[...], _TN,
                                    preferred_element_type=jnp.float32)
                    + lax.dot_general(f_d, w2d_ref[...], _TN,
                                      preferred_element_type=jnp.float32)
                    + b2_ref[...])
            pred_ref[...] = pred.astype(pred_ref.dtype)

    return kernel


def ensemble_forward(rgb_batch, depth_batch, rgb_params, depth_params,
                     *, s_tile_cap=16384, bt_cap=8):
    """rgb_batch / depth_batch: (B, C, T, H, W) (PyTorch NCTHW layout).

    Returns (pred, feature, rgb_loss_dict, depth_loss_dict) matching
    Ensemble.forward.
    """
    B, C, T, H, W = rgb_batch.shape
    S = T * H * W

    w1r, b1r, w2r, b2r = rgb_params
    w1d, b1d, w2d, b2d = depth_params
    hidden = w1r.shape[1]
    n_cls = w2r.shape[1]

    vmem_limit = _device_vmem_limit_bytes()
    n_cores = _tensorcores_per_chip()
    bt = _pick_batch_tile(B, C, n_cores, cap=bt_cap)
    ts = _pick_s_tile(S, bt, C, vmem_limit, cap=s_tile_cap)
    nb = B // bt
    ns = -(-S // ts)
    s_pad = ns * ts
    mask_tail = (s_pad != S)
    inv_s = 1.0 / float(S)

    # NCTHW -> (B*C, S): pure reshape (no transpose, no extra HBM pass).  The
    # streamed block (bt*C, ts) then has a sublane-aligned second-minor dim and
    # S stays dense on the lane axis.
    rgb_x = rgb_batch.reshape(B * C, S)
    dep_x = depth_batch.reshape(B * C, S)
    if mask_tail:
        # TODO(synk): pick T/H/W so S is 128-aligned in production; this pad is
        # one extra HBM pass (padded lanes are masked out in-kernel).
        rgb_x = jnp.pad(rgb_x, ((0, 0), (0, s_pad - S)))
        dep_x = jnp.pad(dep_x, ((0, 0), (0, s_pad - S)))

    # Host-side (free) weight massaging:
    #  * W1 transposed + cast to bf16 so the conv is a native-dtype MXU matmul,
    #  * conv biases as (hidden, 1) columns (broadcast along the lane/S axis),
    #  * ensemble 0.5 averaging folded into classifier weights/bias.
    w1tr = w1r.T.astype(jnp.bfloat16)
    w1td = w1d.T.astype(jnp.bfloat16)
    b1rc = jnp.reshape(b1r, (hidden, 1)).astype(jnp.float32)
    b1dc = jnp.reshape(b1d, (hidden, 1)).astype(jnp.float32)
    w2rh = (0.5 * w2r).astype(jnp.float32)
    w2dh = (0.5 * w2d).astype(jnp.float32)
    b2avg = (0.5 * (b2r + b2d)).astype(jnp.float32)

    def full_spec(arr):
        return pl.BlockSpec(arr.shape, lambda bi, si: (0, 0))

    grid_spec = pltpu.PrefetchScalarGridSpec(
        num_scalar_prefetch=0,
        grid=(nb, ns),                                    # reduction axis last
        in_specs=[
            pl.BlockSpec((bt * C, ts), lambda bi, si: (bi, si)),   # rgb
            pl.BlockSpec((bt * C, ts), lambda bi, si: (bi, si)),   # depth
            full_spec(w1tr), full_spec(b1rc),
            full_spec(w1td), full_spec(b1dc),
            full_spec(w2rh), full_spec(w2dh), full_spec(b2avg),
        ],
        out_specs=[
            pl.BlockSpec((bt, n_cls), lambda bi, si: (bi, 0)),     # avg pred
            pl.BlockSpec((bt, hidden), lambda bi, si: (bi, 0)),    # avg feature
        ],
        scratch_shapes=[
            pltpu.VMEM((hidden, bt), jnp.float32),   # pooled-sum acc, rgb
            pltpu.VMEM((hidden, bt), jnp.float32),   # pooled-sum acc, depth
        ],
    )

    pred, feat = pl.pallas_call(
        _make_ensemble_kernel(bt, C, inv_s, S, ts, mask_tail),
        out_shape=(
            jax.ShapeDtypeStruct((B, n_cls), jnp.float32),
            jax.ShapeDtypeStruct((B, hidden), jnp.float32),
        ),
        grid_spec=grid_spec,
        compiler_params=pltpu.CompilerParams(
            dimension_semantics=("parallel", "arbitrary"),
            vmem_limit_bytes=vmem_limit,
        ),
    )(rgb_x, dep_x, w1tr, b1rc, w1td, b1dc, w2rh, w2dh, b2avg)

    # TODO(synk): the real i3_res50_feature also returns per-branch loss
    # dicts; nothing is computed for them in this synthetic stand-in.
    return pred, feat, {}, {}


def make_branch_params(key, c_in, hidden, n_cls):
    k1, k2, k3, k4 = jax.random.split(key, 4)
    w1 = jax.random.normal(k1, (c_in, hidden), jnp.float32) * 0.1
    b1 = jax.random.normal(k2, (1, hidden), jnp.float32) * 0.01
    w2 = jax.random.normal(k3, (hidden, n_cls), jnp.float32) * 0.1
    b2 = jax.random.normal(k4, (1, n_cls), jnp.float32) * 0.01
    return (w1, b1, w2, b2)


def _ref_ensemble(rgb, dep, rgb_params, depth_params):
    """Pure-JAX reference (bf16 conv matmul, f32 accumulate — same as kernel)."""
    def branch(x, p):
        w1, b1, w2, b2 = p
        b, c = x.shape[0], x.shape[1]
        xs = x.reshape(b, c, -1).astype(jnp.bfloat16)
        h = jnp.einsum("bcs,ch->bsh", xs, w1.astype(jnp.bfloat16),
                       preferred_element_type=jnp.float32)
        h = jnp.maximum(h + b1[None].astype(jnp.float32), 0.0)
        f = jnp.mean(h, axis=1)
        return f @ w2 + b2, f

    pr, fr = branch(rgb, rgb_params)
    pd, fd = branch(dep, depth_params)
    return (pr + pd) / 2.0, (fr + fd) / 2.0


if __name__ == "__main__":
    key = jax.random.PRNGKey(0)
    k_rgb_x, k_dep_x, k_rgb_p, k_dep_p = jax.random.split(key, 4)

    B, C, T, H, W = 2, 4, 4, 8, 8
    HIDDEN, N_CLS = 32, 16

    rgb_batch = jax.random.normal(k_rgb_x, (B, C, T, H, W), jnp.float32)
    depth_batch = jax.random.normal(k_dep_x, (B, C, T, H, W), jnp.float32)

    rgb_params = make_branch_params(k_rgb_p, C, HIDDEN, N_CLS)
    depth_params = make_branch_params(k_dep_p, C, HIDDEN, N_CLS)

    # 1) default tiling (S = 256 fits in one lane-aligned tile).
    pred, feat, _, _ = ensemble_forward(
        rgb_batch, depth_batch, rgb_params, depth_params)
    jax.block_until_ready((pred, feat))
    pref, fref = _ref_ensemble(rgb_batch, depth_batch, rgb_params, depth_params)
    assert jnp.allclose(pred, pref, atol=1e-3), "pred mismatch"
    assert jnp.allclose(feat, fref, atol=1e-3), "feat mismatch"

    # 2) exercise the multi-step S reduction + padded-tail masking path
    #    (S = 3*8*8 = 192 is not a multiple of 128; tile cap forced to 128).
    rgb2 = jax.random.normal(k_rgb_x, (B, C, 3, H, W), jnp.float32)
    dep2 = jax.random.normal(k_dep_x, (B, C, 3, H, W), jnp.float32)
    pred2, feat2, _, _ = ensemble_forward(
        rgb2, dep2, rgb_params, depth_params, s_tile_cap=128)
    jax.block_until_ready((pred2, feat2))
    pref2, fref2 = _ref_ensemble(rgb2, dep2, rgb_params, depth_params)
    assert jnp.allclose(pred2, pref2, atol=1e-3), "pred mismatch (masked tail)"
    assert jnp.allclose(feat2, fref2, atol=1e-3), "feat mismatch (masked tail)"

    print("KERNEL_OK")
</pallas_src>

<mosaic_0001>
module attributes {stable_mosaic.version = 11 : i64} {
  func.func @kernel(%arg0: i32, %arg1: i32, %arg2: memref<8x256xf32, #tpu.memory_space<vmem>>, %arg3: memref<8x256xf32, #tpu.memory_space<vmem>>, %arg4: memref<32x4xbf16, #tpu.memory_space<vmem>>, %arg5: memref<32x1xf32, #tpu.memory_space<vmem>>, %arg6: memref<32x4xbf16, #tpu.memory_space<vmem>>, %arg7: memref<32x1xf32, #tpu.memory_space<vmem>>, %arg8: memref<32x16xf32, #tpu.memory_space<vmem>>, %arg9: memref<32x16xf32, #tpu.memory_space<vmem>>, %arg10: memref<1x16xf32, #tpu.memory_space<vmem>>, %arg11: memref<2x16xf32, #tpu.memory_space<vmem>>, %arg12: memref<2x32xf32, #tpu.memory_space<vmem>>, %arg13: memref<32x2xf32, #tpu.memory_space<vmem>>, %arg14: memref<32x2xf32, #tpu.memory_space<vmem>>) attributes {dimension_semantics = [#tpu.dimension_semantics<parallel>, #tpu.dimension_semantics<arbitrary>], iteration_bounds = array<i64: 1, 1>, scalar_prefetch = 0 : i64, scratch_operands = 2 : i64, tpu.core_type = #tpu.core_type<tc>, window_params = [{transform_indices = @transform_0, window_bounds = array<i64: 8, 256>}, {transform_indices = @transform_1, window_bounds = array<i64: 8, 256>}, {pipeline_mode = #tpu.pipeline_mode<synchronous>, transform_indices = @transform_2, window_bounds = array<i64: 32, 4>}, {pipeline_mode = #tpu.pipeline_mode<synchronous>, transform_indices = @transform_3, window_bounds = array<i64: 32, 1>}, {pipeline_mode = #tpu.pipeline_mode<synchronous>, transform_indices = @transform_4, window_bounds = array<i64: 32, 4>}, {pipeline_mode = #tpu.pipeline_mode<synchronous>, transform_indices = @transform_5, window_bounds = array<i64: 32, 1>}, {pipeline_mode = #tpu.pipeline_mode<synchronous>, transform_indices = @transform_6, window_bounds = array<i64: 32, 16>}, {pipeline_mode = #tpu.pipeline_mode<synchronous>, transform_indices = @transform_7, window_bounds = array<i64: 32, 16>}, {pipeline_mode = #tpu.pipeline_mode<synchronous>, transform_indices = @transform_8, window_bounds = array<i64: 1, 16>}, {transform_indices = @transform_9, window_bounds = array<i64: 2, 16>}, {transform_indices = @transform_10, window_bounds = array<i64: 2, 32>}]} {
    %c0_i32 = arith.constant 0 : i32
    %0 = arith.cmpi eq, %arg1, %c0_i32 : i32
    %1 = arith.extui %0 : i1 to i32
    %c0_i32_0 = arith.constant 0 : i32
    %2 = arith.cmpi ne, %1, %c0_i32_0 : i32
    scf.if %2 {
      %cst_41 = arith.constant 0.000000e+00 : f32
      %87 = vector.broadcast %cst_41 : f32 to vector<32x2xf32>
      %c0_42 = arith.constant 0 : index
      %c0_43 = arith.constant 0 : index
      %88 = vector.load %arg13[%c0_42, %c0_43] : memref<32x2xf32, #tpu.memory_space<vmem>>, vector<32x2xf32>
      tpu.vector_store %arg13[%c0_42, %c0_43], %87 {strides = array<i32>} : memref<32x2xf32, #tpu.memory_space<vmem>>, vector<32x2xf32>,
      %cst_44 = arith.constant 0.000000e+00 : f32
      %89 = vector.broadcast %cst_44 : f32 to vector<32x2xf32>
      %c0_45 = arith.constant 0 : index
      %c0_46 = arith.constant 0 : index
      %90 = vector.load %arg14[%c0_45, %c0_46] : memref<32x2xf32, #tpu.memory_space<vmem>>, vector<32x2xf32>
      tpu.vector_store %arg14[%c0_45, %c0_46], %89 {strides = array<i32>} : memref<32x2xf32, #tpu.memory_space<vmem>>, vector<32x2xf32>,
    } else {
    }
    %3 = tpu.iota {dimensions = array<i32: 1>} : vector<1x2xi32>
    %c0 = arith.constant 0 : index
    %c0_1 = arith.constant 0 : index
    %4 = vector.load %arg4[%c0, %c0_1] : memref<32x4xbf16, #tpu.memory_space<vmem>>, vector<32x4xbf16>
    %c0_2 = arith.constant 0 : index
    %c0_3 = arith.constant 0 : index
    %5 = vector.load %arg5[%c0_2, %c0_3] : memref<32x1xf32, #tpu.memory_space<vmem>>, vector<32x1xf32>
    %cst = arith.constant 0.000000e+00 : f32
    %6 = vector.broadcast %cst : f32 to vector<32x2xf32>
    %c0_4 = arith.constant 0 : index
    %c0_5 = arith.constant 0 : index
    %7 = vector.load %arg2[%c0_4, %c0_5] : memref<8x256xf32, #tpu.memory_space<vmem>>, vector<4x256xf32>
    %8 = arith.truncf %7 : vector<4x256xf32> to vector<4x256xbf16>
    %cst_6 = arith.constant dense<0.000000e+00> : vector<32x256xf32>
    %9 = tpu.matmul %4, %8, %cst_6 {dimension_numbers = #tpu.dot_dimension_numbers<[1], [0], [0], [1], [0, 0, 1, 1], [], []>} : vector<32x4xbf16>, vector<4x256xbf16>, vector<32x256xf32> -> vector<32x256xf32>
    %10 = vector.broadcast %5 : vector<32x1xf32> to vector<32x256xf32>
    %11 = arith.addf %9, %10 : vector<32x256xf32>
    %cst_7 = arith.constant 0.000000e+00 : f32
    %12 = vector.broadcast %cst_7 : f32 to vector<32x256xf32>
    %13 = arith.maximumf %11, %12 : vector<32x256xf32>
    %cst_8 = arith.constant dense<0.000000e+00> : vector<32xf32>
    %14 = vector.multi_reduction <add>, %13, %cst_8 [1] : vector<32x256xf32> to vector<32xf32>
    %15 = vector.shape_cast %14 : vector<32xf32> to vector<32x1xf32>
    %c0_i32_9 = arith.constant 0 : i32
    %16 = vector.broadcast %c0_i32_9 : i32 to vector<1x2xi32>
    %17 = arith.cmpi eq, %3, %16 : vector<1x2xi32>
    %18 = arith.extui %17 : vector<1x2xi1> to vector<1x2xi32>
    %19 = arith.sitofp %18 : vector<1x2xi32> to vector<1x2xf32>
    %20 = vector.broadcast %15 : vector<32x1xf32> to vector<32x2xf32>
    %21 = vector.broadcast %19 : vector<1x2xf32> to vector<32x2xf32>
    %22 = arith.mulf %20, %21 : vector<32x2xf32>
    %23 = arith.addf %6, %22 : vector<32x2xf32>
    %c4 = arith.constant 4 : index
    %c0_10 = arith.constant 0 : index
    %24 = vector.load %arg2[%c4, %c0_10] : memref<8x256xf32, #tpu.memory_space<vmem>>, vector<4x256xf32>
    %25 = arith.truncf %24 : vector<4x256xf32> to vector<4x256xbf16>
    %cst_11 = arith.constant dense<0.000000e+00> : vector<32x256xf32>
    %26 = tpu.matmul %4, %25, %cst_11 {dimension_numbers = #tpu.dot_dimension_numbers<[1], [0], [0], [1], [0, 0, 1, 1], [], []>} : vector<32x4xbf16>, vector<4x256xbf16>, vector<32x256xf32> -> vector<32x256xf32>
    %27 = vector.broadcast %5 : vector<32x1xf32> to vector<32x256xf32>
    %28 = arith.addf %26, %27 : vector<32x256xf32>
    %cst_12 = arith.constant 0.000000e+00 : f32
    %29 = vector.broadcast %cst_12 : f32 to vector<32x256xf32>
    %30 = arith.maximumf %28, %29 : vector<32x256xf32>
    %cst_13 = arith.constant dense<0.000000e+00> : vector<32xf32>
    %31 = vector.multi_reduction <add>, %30, %cst_13 [1] : vector<32x256xf32> to vector<32xf32>
    %32 = vector.shape_cast %31 : vector<32xf32> to vector<32x1xf32>
    %c1_i32 = arith.constant 1 : i32
    %33 = vector.broadcast %c1_i32 : i32 to vector<1x2xi32>
    %34 = arith.cmpi eq, %3, %33 : vector<1x2xi32>
    %35 = arith.extui %34 : vector<1x2xi1> to vector<1x2xi32>
    %36 = arith.sitofp %35 : vector<1x2xi32> to vector<1x2xf32>
    %37 = vector.broadcast %32 : vector<32x1xf32> to vector<32x2xf32>
    %38 = vector.broadcast %36 : vector<1x2xf32> to vector<32x2xf32>
    %39 = arith.mulf %37, %38 : vector<32x2xf32>
    %40 = arith.addf %23, %39 : vector<32x2xf32>
    %c0_14 = arith.constant 0 : index
    %c0_15 = arith.constant 0 : index
    %41 = vector.load %arg13[%c0_14, %c0_15] : memref<32x2xf32, #tpu.memory_space<vmem>>, vector<32x2xf32>
    %42 = arith.addf %41, %40 : vector<32x2xf32>
    %c0_16 = arith.constant 0 : index
    %c0_17 = arith.constant 0 : index
    %43 = vector.load %arg13[%c0_16, %c0_17] : memref<32x2xf32, #tpu.memory_space<vmem>>, vector<32x2xf32>
    tpu.vector_store %arg13[%c0_16, %c0_17], %42 {strides = array<i32>} : memref<32x2xf32, #tpu.memory_space<vmem>>, vector<32x2xf32>,
    %c0_18 = arith.constant 0 : index
    %c0_19 = arith.constant 0 : index
    %44 = vector.load %arg6[%c0_18, %c0_19] : memref<32x4xbf16, #tpu.memory_space<vmem>>, vector<32x4xbf16>
    %c0_20 = arith.constant 0 : index
    %c0_21 = arith.constant 0 : index
    %45 = vector.load %arg7[%c0_20, %c0_21] : memref<32x1xf32, #tpu.memory_space<vmem>>, vector<32x1xf32>
    %cst_22 = arith.constant 0.000000e+00 : f32
    %46 = vector.broadcast %cst_22 : f32 to vector<32x2xf32>
    %c0_23 = arith.constant 0 : index
    %c0_24 = arith.constant 0 : index
    %47 = vector.load %arg3[%c0_23, %c0_24] : memref<8x256xf32, #tpu.memory_space<vmem>>, vector<4x256xf32>
    %48 = arith.truncf %47 : vector<4x256xf32> to vector<4x256xbf16>
    %cst_25 = arith.constant dense<0.000000e+00> : vector<32x256xf32>
    %49 = tpu.matmul %44, %48, %cst_25 {dimension_numbers = #tpu.dot_dimension_numbers<[1], [0], [0], [1], [0, 0, 1, 1], [], []>} : vector<32x4xbf16>, vector<4x256xbf16>, vector<32x256xf32> -> vector<32x256xf32>
    %50 = vector.broadcast %45 : vector<32x1xf32> to vector<32x256xf32>
    %51 = arith.addf %49, %50 : vector<32x256xf32>
    %cst_26 = arith.constant 0.000000e+00 : f32
    %52 = vector.broadcast %cst_26 : f32 to vector<32x256xf32>
    %53 = arith.maximumf %51, %52 : vector<32x256xf32>
    %cst_27 = arith.constant dense<0.000000e+00> : vector<32xf32>
    %54 = vector.multi_reduction <add>, %53, %cst_27 [1] : vector<32x256xf32> to vector<32xf32>
    %55 = vector.shape_cast %54 : vector<32xf32> to vector<32x1xf32>
    %c0_i32_28 = arith.constant 0 : i32
    %56 = vector.broadcast %c0_i32_28 : i32 to vector<1x2xi32>
    %57 = arith.cmpi eq, %3, %56 : vector<1x2xi32>
    %58 = arith.extui %57 : vector<1x2xi1> to vector<1x2xi32>
    %59 = arith.sitofp %58 : vector<1x2xi32> to vector<1x2xf32>
    %60 = vector.broadcast %55 : vector<32x1xf32> to vector<32x2xf32>
    %61 = vector.broadcast %59 : vector<1x2xf32> to vector<32x2xf32>
    %62 = arith.mulf %60, %61 : vector<32x2xf32>
    %63 = arith.addf %46, %62 : vector<32x2xf32>
    %c4_29 = arith.constant 4 : index
    %c0_30 = arith.constant 0 : index
    %64 = vector.load %arg3[%c4_29, %c0_30] : memref<8x256xf32, #tpu.memory_space<vmem>>, vector<4x256xf32>
    %65 = arith.truncf %64 : vector<4x256xf32> to vector<4x256xbf16>
    %cst_31 = arith.constant dense<0.000000e+00> : vector<32x256xf32>
    %66 = tpu.matmul %44, %65, %cst_31 {dimension_numbers = #tpu.dot_dimension_numbers<[1], [0], [0], [1], [0, 0, 1, 1], [], []>} : vector<32x4xbf16>, vector<4x256xbf16>, vector<32x256xf32> -> vector<32x256xf32>
    %67 = vector.broadcast %45 : vector<32x1xf32> to vector<32x256xf32>
    %68 = arith.addf %66, %67 : vector<32x256xf32>
    %cst_32 = arith.constant 0.000000e+00 : f32
    %69 = vector.broadcast %cst_32 : f32 to vector<32x256xf32>
    %70 = arith.maximumf %68, %69 : vector<32x256xf32>
    %cst_33 = arith.constant dense<0.000000e+00> : vector<32xf32>
    %71 = vector.multi_reduction <add>, %70, %cst_33 [1] : vector<32x256xf32> to vector<32xf32>
    %72 = vector.shape_cast %71 : vector<32xf32> to vector<32x1xf32>
    %c1_i32_34 = arith.constant 1 : i32
    %73 = vector.broadcast %c1_i32_34 : i32 to vector<1x2xi32>
    %74 = arith.cmpi eq, %3, %73 : vector<1x2xi32>
    %75 = arith.extui %74 : vector<1x2xi1> to vector<1x2xi32>
    %76 = arith.sitofp %75 : vector<1x2xi32> to vector<1x2xf32>
    %77 = vector.broadcast %72 : vector<32x1xf32> to vector<32x2xf32>
    %78 = vector.broadcast %76 : vector<1x2xf32> to vector<32x2xf32>
    %79 = arith.mulf %77, %78 : vector<32x2xf32>
    %80 = arith.addf %63, %79 : vector<32x2xf32>
    %c0_35 = arith.constant 0 : index
    %c0_36 = arith.constant 0 : index
    %81 = vector.load %arg14[%c0_35, %c0_36] : memref<32x2xf32, #tpu.memory_space<vmem>>, vector<32x2xf32>
    %82 = arith.addf %81, %80 : vector<32x2xf32>
    %c0_37 = arith.constant 0 : index
    %c0_38 = arith.constant 0 : index
    %83 = vector.load %arg14[%c0_37, %c0_38] : memref<32x2xf32, #tpu.memory_space<vmem>>, vector<32x2xf32>
    tpu.vector_store %arg14[%c0_37, %c0_38], %82 {strides = array<i32>} : memref<32x2xf32, #tpu.memory_space<vmem>>, vector<32x2xf32>,
    %c0_i32_39 = arith.constant 0 : i32
    %84 = arith.cmpi eq, %arg1, %c0_i32_39 : i32
    %85 = arith.extui %84 : i1 to i32
    %c0_i32_40 = arith.constant 0 : i32
    %86 = arith.cmpi ne, %85, %c0_i32_40 : i32
    scf.if %86 {
      %c0_41 = arith.constant 0 : index
      %c0_42 = arith.constant 0 : index
      %87 = vector.load %arg13[%c0_41, %c0_42] : memref<32x2xf32, #tpu.memory_space<vmem>>, vector<32x2xf32>
      %cst_43 = arith.constant 3.906250e-03 : f32
      %88 = vector.broadcast %cst_43 : f32 to vector<32x2xf32>
      %89 = arith.mulf %87, %88 : vector<32x2xf32>
      %c0_44 = arith.constant 0 : index
      %c0_45 = arith.constant 0 : index
      %90 = vector.load %arg14[%c0_44, %c0_45] : memref<32x2xf32, #tpu.memory_space<vmem>>, vector<32x2xf32>
      %cst_46 = arith.constant 3.906250e-03 : f32
      %91 = vector.broadcast %cst_46 : f32 to vector<32x2xf32>
      %92 = arith.mulf %90, %91 : vector<32x2xf32>
      %93 = arith.addf %89, %92 : vector<32x2xf32>
      %cst_47 = arith.constant 5.000000e-01 : f32
      %94 = vector.broadcast %cst_47 : f32 to vector<32x2xf32>
      %95 = arith.mulf %94, %93 : vector<32x2xf32>
      %96 = tpu.transpose %95, [1, 0] : vector<32x2xf32> -> vector<2x32xf32>
      %c0_48 = arith.constant 0 : index
      %c0_49 = arith.constant 0 : index
      %97 = vector.load %arg12[%c0_48, %c0_49] : memref<2x32xf32, #tpu.memory_space<vmem>>, vector<2x32xf32>
      tpu.vector_store %arg12[%c0_48, %c0_49], %96 {strides = array<i32>} : memref<2x32xf32, #tpu.memory_space<vmem>>, vector<2x32xf32>,
      %c0_50 = arith.constant 0 : index
      %c0_51 = arith.constant 0 : index
      %98 = vector.load %arg8[%c0_50, %c0_51] : memref<32x16xf32, #tpu.memory_space<vmem>>, vector<32x16xf32>
      %cst_52 = arith.constant dense<0.000000e+00> : vector<2x16xf32>
      %99 = tpu.matmul %89, %98, %cst_52 {dimension_numbers = #tpu.dot_dimension_numbers<[0], [0], [1], [1], [0, 1, 1, 1], [], []>} : vector<32x2xf32>, vector<32x16xf32>, vector<2x16xf32> -> vector<2x16xf32>
      %c0_53 = arith.constant 0 : index
      %c0_54 = arith.constant 0 : index
      %100 = vector.load %arg9[%c0_53, %c0_54] : memref<32x16xf32, #tpu.memory_space<vmem>>, vector<32x16xf32>
      %cst_55 = arith.constant dense<0.000000e+00> : vector<2x16xf32>
      %101 = tpu.matmul %92, %100, %cst_55 {dimension_numbers = #tpu.dot_dimension_numbers<[0], [0], [1], [1], [0, 1, 1, 1], [], []>} : vector<32x2xf32>, vector<32x16xf32>, vector<2x16xf32> -> vector<2x16xf32>
      %102 = arith.addf %99, %101 : vector<2x16xf32>
      %c0_56 = arith.constant 0 : index
      %c0_57 = arith.constant 0 : index
      %103 = vector.load %arg10[%c0_56, %c0_57] : memref<1x16xf32, #tpu.memory_space<vmem>>, vector<1x16xf32>
      %104 = vector.broadcast %103 : vector<1x16xf32> to vector<2x16xf32>
      %105 = arith.addf %102, %104 : vector<2x16xf32>
      %c0_58 = arith.constant 0 : index
      %c0_59 = arith.constant 0 : index
      %106 = vector.load %arg11[%c0_58, %c0_59] : memref<2x16xf32, #tpu.memory_space<vmem>>, vector<2x16xf32>
      tpu.vector_store %arg11[%c0_58, %c0_59], %105 {strides = array<i32>} : memref<2x16xf32, #tpu.memory_space<vmem>>, vector<2x16xf32>,
    } else {
    }
    return
  }
  func.func @transform_0(%arg0: i32, %arg1: i32) -> (i32, i32) {
    %c0_i32 = arith.constant 0 : i32
    return %arg0, %arg1 : i32, i32
  }
  func.func @transform_1(%arg0: i32, %arg1: i32) -> (i32, i32) {
    %c0_i32 = arith.constant 0 : i32
    return %arg0, %arg1 : i32, i32
  }
  func.func @transform_2(%arg0: i32, %arg1: i32) -> (i32, i32) {
    %c0_i32 = arith.constant 0 : i32
    %c0_i32_0 = arith.constant 0 : i32
    %c0_i32_1 = arith.constant 0 : i32
    return %c0_i32, %c0_i32_0 : i32, i32
  }
  func.func @transform_3(%arg0: i32, %arg1: i32) -> (i32, i32) {
    %c0_i32 = arith.constant 0 : i32
    %c0_i32_0 = arith.constant 0 : i32
    %c0_i32_1 = arith.constant 0 : i32
    return %c0_i32, %c0_i32_0 : i32, i32
  }
  func.func @transform_4(%arg0: i32, %arg1: i32) -> (i32, i32) {
    %c0_i32 = arith.constant 0 : i32
    %c0_i32_0 = arith.constant 0 : i32
    %c0_i32_1 = arith.constant 0 : i32
    return %c0_i32, %c0_i32_0 : i32, i32
  }
  func.func @transform_5(%arg0: i32, %arg1: i32) -> (i32, i32) {
    %c0_i32 = arith.constant 0 : i32
    %c0_i32_0 = arith.constant 0 : i32
    %c0_i32_1 = arith.constant 0 : i32
    return %c0_i32, %c0_i32_0 : i32, i32
  }
  func.func @transform_6(%arg0: i32, %arg1: i32) -> (i32, i32) {
    %c0_i32 = arith.constant 0 : i32
    %c0_i32_0 = arith.constant 0 : i32
    %c0_i32_1 = arith.constant 0 : i32
    return %c0_i32, %c0_i32_0 : i32, i32
  }
  func.func @transform_7(%arg0: i32, %arg1: i32) -> (i32, i32) {
    %c0_i32 = arith.constant 0 : i32
    %c0_i32_0 = arith.constant 0 : i32
    %c0_i32_1 = arith.constant 0 : i32
    return %c0_i32, %c0_i32_0 : i32, i32
  }
  func.func @transform_8(%arg0: i32, %arg1: i32) -> (i32, i32) {
    %c0_i32 = arith.constant 0 : i32
    %c0_i32_0 = arith.constant 0 : i32
    %c0_i32_1 = arith.constant 0 : i32
    return %c0_i32, %c0_i32_0 : i32, i32
  }
  func.func @transform_9(%arg0: i32, %arg1: i32) -> (i32, i32) {
    %c0_i32 = arith.constant 0 : i32
    %c0_i32_0 = arith.constant 0 : i32
    return %arg0, %c0_i32 : i32, i32
  }
  func.func @transform_10(%arg0: i32, %arg1: i32) -> (i32, i32) {
    %c0_i32 = arith.constant 0 : i32
    %c0_i32_0 = arith.constant 0 : i32
    return %arg0, %c0_i32 : i32, i32
  }
}

</mosaic_0001>

<bundles_post_ra>
// kernel: tpu_custom_call.1
= control target key start
LH: loop header
LB: loop body
LE: loop exit
PB: predicated region body
PF: predicated region fallthrough
CT: control target
= control target key end

     0   :  { %16 = vsyncpa [#allocation5], 0  ;;  %vm101_vm0 = vcmask 1041408   ;;  %v804_v11 = vmov 0   ;;  %vm94_vm1 = vcmask 31744   ;;  %s1028_s0 = inlined_call_operand.vmem [shape: f32[8,256], index: 0, kind: input, shape index: {}]   ;;  %s1029_s1 = inlined_call_operand.vmem [shape: f32[8,256], index: 1, kind: input, shape index: {}]   ;;  %s1030_s2 = inlined_call_operand.vmem [shape: bf16[32,4], index: 2, kind: input, shape index: {}]   ;;  %s1031_s3 = inlined_call_operand.vmem [shape: f32[32,1], index: 3, kind: input, shape index: {}]   ;;  %s1032_s4 = inlined_call_operand.vmem [shape: bf16[32,4], index: 4, kind: input, shape index: {}]   ;;  %s1033_s5 = inlined_call_operand.vmem [shape: f32[32,1], index: 5, kind: input, shape index: {}]   ;;  %s1034_s6 = inlined_call_operand.vmem [shape: f32[32,16], index: 6, kind: input, shape index: {}]   ;;  %s1035_s7 = inlined_call_operand.vmem [shape: f32[32,16], index: 7, kind: input, shape index: {}]   ;;  %s1036_s8 = inlined_call_operand.vmem [shape: f32[1,16], index: 8, kind: input, shape index: {}]   ;;  %s1037_s9 = inlined_call_operand.hbm [shape: f32[2,16], index: 9, kind: output, shape index: {0}]   ;;  %s1038_s10 = inlined_call_operand.hbm [shape: f32[2,32], index: 10, kind: output, shape index: {1}]  }
   0x1   :  { %v60_v0 = vld [vmem:[%s1028_s0] sm:$0xf]  ;;  %v61_v1 = vld [vmem:[%s1028_s0 + $0x8] sm:$0xf]  ;;  %v177_v4 = vld [vmem:[%s1028_s0] sm:$0xf0]  ;;  %748 = vset.pattern.permute.xlu0 %v804_v11  ;;  %749 = vset.pattern.permute.xlu1 %v804_v11 }
   0x2   :  { %v62_v2 = vpack.c.bf16 %v60_v0, %v60_v0  ;;  %v63_v3 = vpack.c.bf16 %v61_v1, %v61_v1  ;;  %v178_v5 = vld [vmem:[%s1028_s0 + $0x8] sm:$0xf0]  ;;  %v179_v6 = vpack.c.bf16 %v177_v4, %v177_v4  ;;  %v393_v8 = vld [vmem:[%s1029_s1] sm:$0xf0]  ;;  %v281_v10 = vld [vmem:[%s1029_s1] sm:$0xf]  ;;  %750 = vset.pattern.permute.xlu2 %v804_v11 }
   0x3   :  { %v180_v7 = vpack.c.bf16 %v178_v5, %v178_v5  ;;  %v394_v9 = vld [vmem:[%s1029_s1 + $0x8] sm:$0xf0]  ;;  %v395_v14 = vpack.c.bf16 %v393_v8, %v393_v8  ;;  %v282_v16 = vld [vmem:[%s1029_s1 + $0x8] sm:$0xf]  ;;  %v56_v17 = vld [vmem:[%s1031_s3] sm:$0xff]  ;;  %v283_v21 = vpack.c.bf16 %v281_v10, %v281_v10 }
   0x4   :  { %v103_v12 = vsel %vm101_vm0, %v62_v2, 0  ;;  %v106_v13 = vsel %vm101_vm0, %v63_v3, 0  ;;  %v396_v15 = vpack.c.bf16 %v394_v9, %v394_v9  ;;  %v183_v18 = vrot.slane %v179_v6, 2  ;;  %v740_v20 = vld [vmem:[%s1030_s2] sm:$0xff]  ;;  %v57_v23 = vld [vmem:[%s1031_s3 + $0x8] sm:$0xff]  ;;  %66 = vperm.xlu0 %748, %v56_v17  }
   0x5   :  { %115 = vmatpush.bf16.msra.mxu0 %v103_v12  ;;  %134 = vmatpush.bf16.msra.mxu1 %v106_v13  ;;  %v184_v19 = vrot.slane %v180_v7, 2  ;;  %v284_v22 = vpack.c.bf16 %v282_v16, %v282_v16  ;;  %v399_v24 = vrot.slane %v395_v14, 2 }
   0x6   :  { %v400_v25 = vrot.slane %v396_v15, 2  ;;  %71 = vperm.xlu1 %749, %v57_v23   ;;  %v186_v26 = vsel %vm101_vm0, %v183_v18, 0 }
   0x7   :  { %v189_v27 = vsel %vm101_vm0, %v184_v19, 0 }
   0x8   :  { %17 = vsyncpa [#allocation7], 0  ;;  %198 = vmatpush.bf16.msra.mxu2 %v186_v26  ;;  %217 = vmatpush.bf16.msra.mxu3 %v189_v27  ;;  %v402_v28 = vsel %vm101_vm0, %v399_v24, 0  ;;  %v405_v29 = vsel %vm101_vm0, %v400_v25, 0  ;;  %v322_v30 = vsel %vm101_vm0, %v283_v21, 0  ;;  %v325_v31 = vsel %vm101_vm0, %v284_v22, 0 }
   0x9   :  { %712 = vmatmul.msk.bf16.vlgmr.msra.gmra.mxu0 %vm94_vm1, %v740_v20  ;;  %714 = vmatmul.msk.bf16.vlgmr.msra.gmra.mxu1 %vm94_vm1, %v740_v20  ;;  %v277_v32 = vld [vmem:[%s1033_s5] sm:$0xff]  ;;  %v278_v33 = vld [vmem:[%s1033_s5 + $0x8] sm:$0xff]  ;;  %v59_v34 = vld [vmem:[%s1031_s3 + $0x18] sm:$0xff]  ;;  %vm41_vm2 = vcmask 15360   ;;  %vm586_vm5 = vcmask 261120   ;;  %s690_s23 = sshll.u32 %s1038_s10, 4  ;;  %s691_s23 = int_to_ptr.hbm [resolvable:$true] %s690_s23 }
   0xa   :  { %334 = vmatpush.bf16.msrb.mxu0 %v322_v30  ;;  %353 = vmatpush.bf16.msrb.mxu1 %v325_v31  ;;  %v280_v35 = vld [vmem:[%s1033_s5 + $0x18] sm:$0xff]  ;;  %v741_v36 = vld [vmem:[%s1030_s2 + $0x8] sm:$0xff]  ;;  %v58_v37 = vld [vmem:[%s1031_s3 + $0x10] sm:$0xff]  ;;  %vm544_vm6 = vcmask 254976   ;;  %s807_s26 = smov [#allocation4]   ;;  %s679_s3 = sshll.u32 %s1037_s9, 4  ;;  %s680_s3 = int_to_ptr.hbm [resolvable:$true] %s679_s3 }
   0xb   :  { %717 = vmatmul.msk.bf16.vlgmr.msra.gmra.mxu2 %vm94_vm1, %v740_v20  ;;  %719 = vmatmul.msk.bf16.vlgmr.msra.gmra.mxu3 %vm94_vm1, %v740_v20  ;;  %v279_v38 = vld [vmem:[%s1033_s5 + $0x10] sm:$0xff]  ;;  %v742_v39 = vld [vmem:[%s1032_s4] sm:$0xff]  ;;  %v743_v40 = vld [vmem:[%s1032_s4 + $0x8] sm:$0xff]  ;;  %s677_s2 = sshll.u32 %s807_s26, 4  ;;  %vm670_vm7 = vcmask 123904   ;;  %s678_s2 = int_to_ptr.vmem [resolvable:$true] %s677_s2 }
   0xc   :  { %414 = vmatpush.bf16.msrb.mxu2 %v402_v28  ;;  %433 = vmatpush.bf16.msrb.mxu3 %v405_v29 }
   0xd   :  { %287 = vperm.xlu0 %748, %v277_v32   ;;  %76 = vperm.xlu2 %750, %v58_v37  }
   0xe   :  { %292 = vperm.xlu1 %749, %v278_v33  }
  0x15   :  { %81 = vperm.xlu0 %748, %v59_v34   ;;  %297 = vperm.xlu2 %750, %v279_v38  }
  0x16   :  { %302 = vperm.xlu1 %749, %v280_v35  }
  0x19   :  { %713 = vmatmul.msk.bf16.gmra.mxu0 %vm94_vm1, %v741_v36  ;;  %715 = vmatmul.msk.bf16.gmra.mxu1 %vm94_vm1, %v741_v36 }
  0x1b   :  { %718 = vmatmul.msk.bf16.gmra.mxu2 %vm94_vm1, %v741_v36  ;;  %720 = vmatmul.msk.bf16.gmra.mxu3 %vm94_vm1, %v741_v36 }
  0x29   :  { %730 = vmatmul.msk.bf16.vlgmr.msrb.gmra.mxu0 %vm94_vm1, %v742_v39  ;;  %732 = vmatmul.msk.bf16.vlgmr.msrb.gmra.mxu1 %vm94_vm1, %v742_v39 }
  0x2b   :  { %734 = vmatmul.msk.bf16.vlgmr.msrb.gmra.mxu2 %vm94_vm1, %v742_v39  ;;  %736 = vmatmul.msk.bf16.vlgmr.msrb.gmra.mxu3 %vm94_vm1, %v742_v39 }
  0x39   :  { %731 = vmatmul.msk.bf16.gmra.mxu0 %vm94_vm1, %v743_v40  ;;  %733 = vmatmul.msk.bf16.gmra.mxu1 %vm94_vm1, %v743_v40 }
  0x3b   :  { %735 = vmatmul.msk.bf16.gmra.mxu2 %vm94_vm1, %v743_v40  ;;  %737 = vmatmul.msk.bf16.gmra.mxu3 %vm94_vm1, %v743_v40 }
  0x67   :  { %v77_v7 = vpop.permute.xlu2 %76 }
  0x76   :  { %v67_v41 = vpop.permute.xlu0 %66 }
  0x78   :  { %v72_v49 = vpop.permute.xlu1 %71 }
  0x7f   :  { %v288_v6 = vpop.permute.xlu0 %287 }
  0x86   :  { %v117_v42 = vpop.f32.mrf.mxu0  ;;  %v136_v43 = vpop.f32.mrf.mxu1 }
  0x87   :  { %v118_v44 = vadd.f32 %v117_v42, %v67_v41  ;;  %v137_v45 = vadd.f32 %v136_v43, %v67_v41  ;;  %v82_v24 = vpop.permute.xlu0 %81 }
  0x89   :  { %v146_v46 = vmax.f32 %v118_v44, 0.0  ;;  %v147_v47 = vmax.f32 %v137_v45, 0.0 }
  0x8b   :  { %v154_v48 = vadd.f32 %v147_v47, %v146_v46 }
  0x8d   :  { %155 = vadd.xlane.f32.xlu2 %v154_v48 }
  0x8e   :  { %v119_v50 = vpop.f32.mrf.mxu0  ;;  %v138_v51 = vpop.f32.mrf.mxu1 }
  0x8f   :  { %v120_v52 = vadd.f32 %v119_v50, %v72_v49  ;;  %v139_v53 = vadd.f32 %v138_v51, %v72_v49  ;;  %v200_v54 = vpop.f32.mrf.mxu2  ;;  %v219_v55 = vpop.f32.mrf.mxu3 }
  0x90   :  { %v201_v56 = vadd.f32 %v200_v54, %v67_v41  ;;  %v220_v57 = vadd.f32 %v219_v55, %v67_v41 }
  0x91   :  { %v148_v58 = vmax.f32 %v120_v52, 0.0  ;;  %v149_v59 = vmax.f32 %v139_v53, 0.0  ;;  %v293_v52 = vpop.permute.xlu1 %292 }
  0x92   :  { %v229_v60 = vmax.f32 %v201_v56, 0.0  ;;  %v230_v61 = vmax.f32 %v220_v57, 0.0 }
  0x93   :  { %v157_v62 = vadd.f32 %v149_v59, %v148_v58 }
  0x94   :  { %v237_v63 = vadd.f32 %v230_v61, %v229_v60 }
  0x95   :  { %158 = vadd.xlane.f32.xlu2 %v157_v62 }
  0x96   :  { %238 = vadd.xlane.f32.xlu0 %v237_v63  ;;  %v122_v0 = vpop.f32.mrf.mxu0  ;;  %v141_v1 = vpop.f32.mrf.mxu1 }
  0x97   :  { %v202_v2 = vpop.f32.mrf.mxu2  ;;  %v221_v3 = vpop.f32.mrf.mxu3  ;;  %v123_v8 = vadd.f32 %v122_v0, %v77_v7  ;;  %v142_v9 = vadd.f32 %v141_v1, %v77_v7 }
  0x98   :  { %v203_v4 = vadd.f32 %v202_v2, %v72_v49  ;;  %v222_v5 = vadd.f32 %v221_v3, %v72_v49  ;;  %v298_v3 = vpop.permute.xlu2 %297 }
  0x99   :  { %v150_v13 = vmax.f32 %v123_v8, 0.0  ;;  %v151_v14 = vmax.f32 %v142_v9, 0.0 }
  0x9a   :  { %v231_v10 = vmax.f32 %v203_v4, 0.0  ;;  %v232_v11 = vmax.f32 %v222_v5, 0.0 }
  0x9b   :  { %v160_v23 = vadd.f32 %v151_v14, %v150_v13 }
  0x9c   :  { %v240_v12 = vadd.f32 %v232_v11, %v231_v10 }
  0x9e   :  { %241 = vadd.xlane.f32.xlu0 %v240_v12  ;;  %v124_v15 = vpop.f32.mrf.mxu0  ;;  %v143_v16 = vpop.f32.mrf.mxu1 }
  0x9f   :  { %v205_v17 = vpop.f32.mrf.mxu2  ;;  %v224_v18 = vpop.f32.mrf.mxu3  ;;  %v125_v25 = vadd.f32 %v124_v15, %v82_v24  ;;  %v144_v26 = vadd.f32 %v143_v16, %v82_v24 }
  0xa0   :  { %v206_v19 = vadd.f32 %v205_v17, %v77_v7  ;;  %v225_v20 = vadd.f32 %v224_v18, %v77_v7  ;;  %v303_v18 = vpop.permute.xlu1 %302 }
  0xa1   :  { %v152_v32 = vmax.f32 %v125_v25, 0.0  ;;  %v153_v33 = vmax.f32 %v144_v26, 0.0 }
  0xa2   :  { %v233_v21 = vmax.f32 %v206_v19, 0.0  ;;  %v234_v22 = vmax.f32 %v225_v20, 0.0 }
  0xa3   :  { %v163_v40 = vadd.f32 %v153_v33, %v152_v32  ;;  %v805_v33 = vmov 0.0  }
  0xa4   :  { %v243_v27 = vadd.f32 %v234_v22, %v233_v21  ;;  %42 = vst.msk [vmem:[#allocation2] sm:$0xff] %vm41_vm2, %v805_v33 }
  0xa5   :  { %43 = vst.msk [vmem:[#allocation2 + $0x8] sm:$0xff] %vm41_vm2, %v805_v33 }
  0xa6   :  { %244 = vadd.xlane.f32.xlu1 %v243_v27  ;;  %161 = vadd.xlane.f32.xlu0 %v160_v23  ;;  %v336_v28 = vpop.f32.mrf.mxu0  ;;  %v355_v29 = vpop.f32.mrf.mxu1  ;;  %44 = vst.msk [vmem:[#allocation2 + $0x10] sm:$0xff] %vm41_vm2, %v805_v33 }
  0xa7   :  { %v207_v30 = vpop.f32.mrf.mxu2  ;;  %v226_v31 = vpop.f32.mrf.mxu3  ;;  %v337_v38 = vadd.f32 %v336_v28, %v288_v6  ;;  %v356_v39 = vadd.f32 %v355_v29, %v288_v6  ;;  %45 = vst.msk [vmem:[#allocation2 + $0x18] sm:$0xff] %vm41_vm2, %v805_v33 }
  0xa8   :  { %v208_v34 = vadd.f32 %v207_v30, %v82_v24  ;;  %v227_v35 = vadd.f32 %v226_v31, %v82_v24  ;;  %46 = vst.msk [vmem:[#allocation3] sm:$0xff] %vm41_vm2, %v805_v33 }
  0xa9   :  { %v365_v46 = vmax.f32 %v337_v38, 0.0  ;;  %v366_v47 = vmax.f32 %v356_v39, 0.0  ;;  %47 = vst.msk [vmem:[#allocation3 + $0x8] sm:$0xff] %vm41_vm2, %v805_v33 }
  0xaa   :  { %v235_v36 = vmax.f32 %v208_v34, 0.0  ;;  %v236_v37 = vmax.f32 %v227_v35, 0.0  ;;  %48 = vst.msk [vmem:[#allocation3 + $0x10] sm:$0xff] %vm41_vm2, %v805_v33  ;;  %v50_v34 = vlaneseq }
  0xab   :  { %v373_v55 = vadd.f32 %v366_v47, %v365_v46  ;;  %49 = vst.msk [vmem:[#allocation3 + $0x18] sm:$0xff] %vm41_vm2, %v805_v33 }
  0xac   :  { %v246_v41 = vadd.f32 %v236_v37, %v235_v36  ;;  %v51_v35 = vand.u32 127, %v50_v34 }
  0xae   :  { %164 = vadd.xlane.f32.xlu1 %v163_v40  ;;  %247 = vadd.xlane.f32.xlu2 %v246_v41  ;;  %v338_v42 = vpop.f32.mrf.mxu0  ;;  %v357_v43 = vpop.f32.mrf.mxu1  ;;  %vm166_vm3 = vcmp.eq.s32.totalorder %v51_v35, 0  ;;  %vm249_vm4 = vcmp.eq.s32.totalorder %v51_v35, 1 }
  0xaf   :  { %v416_v44 = vpop.f32.mrf.mxu2  ;;  %v435_v45 = vpop.f32.mrf.mxu3  ;;  %v339_v53 = vadd.f32 %v338_v42, %v293_v52  ;;  %v358_v54 = vadd.f32 %v357_v43, %v293_v52  ;;  %v955_v37 = vsel %vm166_vm3, 1.0, %v805_v33  ;;  %v957_v38 = vsel %vm249_vm4, 1.0, %v805_v33  ;;  %v260_v42 = vld [vmem:[#allocation2] sm:$0xff] }
  0xb0   :  { %v417_v48 = vadd.f32 %v416_v44, %v288_v6  ;;  %v436_v49 = vadd.f32 %v435_v45, %v288_v6 }
  0xb1   :  { %v367_v61 = vmax.f32 %v339_v53, 0.0  ;;  %v368_v62 = vmax.f32 %v358_v54, 0.0 }
  0xb2   :  { %v445_v50 = vmax.f32 %v417_v48, 0.0  ;;  %v446_v51 = vmax.f32 %v436_v49, 0.0  ;;  %v261_v49 = vld [vmem:[#allocation2 + $0x8] sm:$0xff] }
  0xb3   :  { %v376_v6 = vadd.f32 %v368_v62, %v367_v61 }
  0xb4   :  { %v453_v56 = vadd.f32 %v446_v51, %v445_v50 }
  0xb6   :  { %374 = vadd.xlane.f32.xlu1 %v373_v55  ;;  %454 = vadd.xlane.f32.xlu2 %v453_v56  ;;  %v341_v57 = vpop.f32.mrf.mxu0  ;;  %v360_v58 = vpop.f32.mrf.mxu1 }
  0xb7   :  { %v418_v59 = vpop.f32.mrf.mxu2  ;;  %v437_v60 = vpop.f32.mrf.mxu3  ;;  %v342_v4 = vadd.f32 %v341_v57, %v298_v3  ;;  %v361_v5 = vadd.f32 %v360_v58, %v298_v3  ;;  %v262_v58 = vld [vmem:[#allocation2 + $0x10] sm:$0xff] }
  0xb8   :  { %v419_v63 = vadd.f32 %v418_v59, %v293_v52  ;;  %v438_v0 = vadd.f32 %v437_v60, %v293_v52 }
  0xb9   :  { %v369_v10 = vmax.f32 %v342_v4, 0.0  ;;  %v370_v11 = vmax.f32 %v361_v5, 0.0 }
  0xba   :  { %v447_v1 = vmax.f32 %v419_v63, 0.0  ;;  %v448_v2 = vmax.f32 %v438_v0, 0.0 }
  0xbb   :  { %v379_v22 = vadd.f32 %v370_v11, %v369_v10 }
  0xbc   :  { %v456_v7 = vadd.f32 %v448_v2, %v447_v1 }
  0xbe   :  { %377 = vadd.xlane.f32.xlu1 %v376_v6  ;;  %457 = vadd.xlane.f32.xlu2 %v456_v7  ;;  %v343_v14 = vpop.f32.mrf.mxu0  ;;  %v362_v15 = vpop.f32.mrf.mxu1 }
  0xbf   :  { %v421_v8 = vpop.f32.mrf.mxu2  ;;  %v440_v9 = vpop.f32.mrf.mxu3  ;;  %v344_v19 = vadd.f32 %v343_v14, %v303_v18  ;;  %v363_v20 = vadd.f32 %v362_v15, %v303_v18 }
  0xc0   :  { %v422_v12 = vadd.f32 %v421_v8, %v298_v3  ;;  %v441_v13 = vadd.f32 %v440_v9, %v298_v3  ;;  %v263_v3 = vld [vmem:[#allocation2 + $0x18] sm:$0xff] }
  0xc1   :  { %v371_v25 = vmax.f32 %v344_v19, 0.0  ;;  %v372_v26 = vmax.f32 %v363_v20, 0.0 }
  0xc2   :  { %v449_v16 = vmax.f32 %v422_v12, 0.0  ;;  %v450_v17 = vmax.f32 %v441_v13, 0.0  ;;  %v473_v12 = vld [vmem:[#allocation3] sm:$0xff] }
  0xc3   :  { %v382_v32 = vadd.f32 %v372_v26, %v371_v25  ;;  %v549_v25 = vld [vmem:[%s1034_s6 + $0x18] sm:$0xff]  ;;  %v552_v26 = vld [vmem:[%s1035_s7 + $0x10] sm:$0xff] }
  0xc4   :  { %v459_v21 = vadd.f32 %v450_v17, %v449_v16  ;;  %657 = vmatpush.msra.mxu1 %v549_v25 }
  0xc6   :  { %460 = vadd.xlane.f32.xlu0 %v459_v21  ;;  %380 = vadd.xlane.f32.xlu2 %v379_v22  ;;  %v474_v21 = vld [vmem:[#allocation3 + $0x8] sm:$0xff] }
  0xc7   :  { %v423_v23 = vpop.f32.mrf.mxu2  ;;  %v442_v24 = vpop.f32.mrf.mxu3 }
  0xc8   :  { %v424_v27 = vadd.f32 %v423_v23, %v303_v18  ;;  %v443_v28 = vadd.f32 %v442_v24, %v303_v18  ;;  %v553_v24 = vld [vmem:[%s1035_s7 + $0x18] sm:$0xff] }
  0xc9   :  { %602 = vmatpush.msra.mxu0 %v553_v24 }
  0xca   :  { %v451_v29 = vmax.f32 %v424_v27, 0.0  ;;  %v452_v30 = vmax.f32 %v443_v28, 0.0  ;;  %v548_v28 = vld [vmem:[%s1034_s6 + $0x10] sm:$0xff] }
  0xcb   :  { %603 = vmatpush.msra.mxu0 %v552_v26  ;;  %658 = vmatpush.msra.mxu1 %v548_v28 }
  0xcc   :  { %v462_v31 = vadd.f32 %v452_v30, %v451_v29  ;;  %v551_v30 = vld [vmem:[%s1035_s7 + $0x8] sm:$0xff] }
  0xcd   :  { %604 = vmatpush.msra.mxu0 %v551_v30 }
  0xce   :  { %463 = vadd.xlane.f32.xlu1 %v462_v31  ;;  %383 = vadd.xlane.f32.xlu0 %v382_v32  ;;  %v547_v31 = vld [vmem:[%s1034_s6 + $0x8] sm:$0xff] }
  0xcf   :  { %659 = vmatpush.msra.mxu1 %v547_v31 }
 0x100   :  { %v156_v36 = vpop.xlane.xlu2 %155 }
 0x101   :  { %v169_v39 = vmul.f32 %v955_v37, %v156_v36 }
 0x108   :  { %v159_v45 = vpop.xlane.xlu2 %158 }
 0x109   :  { %v239_v40 = vpop.xlane.xlu0 %238  ;;  %v170_v47 = vmul.f32 %v955_v37, %v159_v45 }
 0x10a   :  { %v252_v41 = vmul.f32 %v957_v38, %v239_v40  ;;  %v546_v40 = vld [vmem:[%s1034_s6] sm:$0xff]  ;;  %s806_s6 = smov [#allocation6]  }
 0x10b   :  { %660 = vmatpush.msra.mxu1 %v546_v40 }
 0x10c   :  { %v256_v43 = vadd.f32 %v252_v41, %v169_v39  ;;  %v550_v39 = vld [vmem:[%s1035_s7] sm:$0xff]  ;;  %v475_v41 = vld [vmem:[#allocation3 + $0x10] sm:$0xff]  ;;  %s688_s7 = sshll.u32 %s806_s6, 4  ;;  %s689_s7 = int_to_ptr.vmem [resolvable:$true] %s688_s7 }
 0x10d   :  { %605 = vmatpush.msra.mxu0 %v550_v39 }
 0x10e   :  { %v264_v44 = vadd.f32 %v260_v42, %v256_v43 }
 0x110   :  { %269 = vst.msk [vmem:[#allocation2] sm:$0xff] %vm41_vm2, %v264_v44 }
 0x111   :  { %v242_v46 = vpop.xlane.xlu0 %241 }
 0x112   :  { %v253_v48 = vmul.f32 %v957_v38, %v242_v46 }
 0x114   :  { %v257_v50 = vadd.f32 %v253_v48, %v170_v47 }
 0x116   :  { %v265_v51 = vadd.f32 %v261_v49, %v257_v50 }
 0x117   :  { %v488_v52 = vld [vmem:[#allocation2] sm:$0xff] }
 0x118   :  { %270 = vst.msk [vmem:[#allocation2 + $0x8] sm:$0xff] %vm41_vm2, %v265_v51  ;;  %v492_v53 = vmul.f32 0.00390625, %v488_v52  ;;  %v476_v52 = vld [vmem:[#allocation3 + $0x18] sm:$0xff] }
 0x119   :  { %v245_v54 = vpop.xlane.xlu1 %244  ;;  %v162_v55 = vpop.xlane.xlu0 %161 }
 0x11a   :  { %v254_v56 = vmul.f32 %v957_v38, %v245_v54  ;;  %v171_v57 = vmul.f32 %v955_v37, %v162_v55  ;;  %610 = vxpose.xlu0.b32.start [1/4] (short) (narrow) %v492_v53, 8 }
 0x11c   :  { %v258_v59 = vadd.f32 %v254_v56, %v171_v57 }
 0x11e   :  { %v266_v60 = vadd.f32 %v262_v58, %v258_v59 }
 0x11f   :  { %v489_v61 = vld [vmem:[#allocation2 + $0x8] sm:$0xff] }
 0x120   :  { %271 = vst.msk [vmem:[#allocation2 + $0x10] sm:$0xff] %vm41_vm2, %v266_v60  ;;  %v968_v62 = vmul.f32 0.00390625, %v489_v61 }
 0x121   :  { %v165_v63 = vpop.xlane.xlu1 %164  ;;  %v248_v0 = vpop.xlane.xlu2 %247 }
 0x122   :  { %v172_v1 = vmul.f32 %v955_v37, %v165_v63  ;;  %v255_v2 = vmul.f32 %v957_v38, %v248_v0  ;;  %611 = vxpose.xlu0.b32.cont [2/4] (short) (narrow) %v968_v62, 8 }
 0x124   :  { %v259_v4 = vadd.f32 %v255_v2, %v172_v1  ;;  %v751_v2 = vld [vmem:[%s1036_s8] ss:$0 sm:$0xff] }
 0x126   :  { %v267_v5 = vadd.f32 %v263_v3, %v259_v4 }
 0x127   :  { %v490_v6 = vld [vmem:[#allocation2 + $0x10] sm:$0xff] }
 0x128   :  { %272 = vst.msk [vmem:[#allocation2 + $0x18] sm:$0xff] %vm41_vm2, %v267_v5  ;;  %v974_v7 = vmul.f32 0.00390625, %v490_v6 }
 0x129   :  { %v375_v8 = vpop.xlane.xlu1 %374  ;;  %v455_v9 = vpop.xlane.xlu2 %454 }
 0x12a   :  { %v385_v10 = vmul.f32 %v955_v37, %v375_v8  ;;  %v465_v11 = vmul.f32 %v957_v38, %v455_v9  ;;  %612 = vxpose.xlu0.b32.cont [3/4] (short) (narrow) %v974_v7, 8 }
 0x12c   :  { %v469_v13 = vadd.f32 %v465_v11, %v385_v10 }
 0x12e   :  { %v477_v14 = vadd.f32 %v473_v12, %v469_v13 }
 0x12f   :  { %v491_v15 = vld [vmem:[#allocation2 + $0x18] sm:$0xff] }
 0x130   :  { %481 = vst.msk [vmem:[#allocation3] sm:$0xff] %vm41_vm2, %v477_v14  ;;  %v980_v16 = vmul.f32 0.00390625, %v491_v15 }
 0x131   :  { %v378_v17 = vpop.xlane.xlu1 %377  ;;  %v458_v18 = vpop.xlane.xlu2 %457 }
 0x132   :  { %v386_v19 = vmul.f32 %v955_v37, %v378_v17  ;;  %v466_v20 = vmul.f32 %v957_v38, %v458_v18  ;;  %613 = vxpose.xlu0.b32.end [4/4] (short) (narrow) %v980_v16, 8 }
 0x134   :  { %v470_v22 = vadd.f32 %v466_v20, %v386_v19 }
 0x136   :  { %v478_v23 = vadd.f32 %v474_v21, %v470_v22 }
 0x137   :  { %v496_v27 = vld [vmem:[#allocation3] sm:$0xff] }
 0x138   :  { %482 = vst.msk [vmem:[#allocation3 + $0x8] sm:$0xff] %vm41_vm2, %v478_v23  ;;  %v500_v29 = vmul.f32 0.00390625, %v496_v27 }
 0x139   :  { %v461_v32 = vpop.xlane.xlu0 %460  ;;  %v381_v33 = vpop.xlane.xlu2 %380 }
 0x13a   :  { %v467_v34 = vmul.f32 %v957_v38, %v461_v32  ;;  %v387_v35 = vmul.f32 %v955_v37, %v381_v33  ;;  %554 = vxpose.xlu2.b32.start [1/4] (short) (narrow) %v500_v29, 8  ;;  %v504_v36 = vadd.f32 %v500_v29, %v492_v53 }
 0x13c   :  { %v471_v42 = vadd.f32 %v467_v34, %v387_v35  ;;  %v508_v43 = vmul.f32 0.5, %v504_v36 }
 0x13e   :  { %v479_v44 = vadd.f32 %v475_v41, %v471_v42  ;;  %512 = vxpose.xlu1.b32.start [1/4] (short) (narrow) %v508_v43, 8 }
 0x13f   :  { %v497_v45 = vld [vmem:[#allocation3 + $0x8] sm:$0xff] }
 0x140   :  { %483 = vst.msk [vmem:[#allocation3 + $0x10] sm:$0xff] %vm41_vm2, %v479_v44  ;;  %v501_v46 = vmul.f32 0.00390625, %v497_v45 }
 0x141   :  { %v464_v47 = vpop.xlane.xlu1 %463  ;;  %v384_v48 = vpop.xlane.xlu0 %383 }
 0x142   :  { %v468_v49 = vmul.f32 %v957_v38, %v464_v47  ;;  %v388_v50 = vmul.f32 %v955_v37, %v384_v48  ;;  %555 = vxpose.xlu2.b32.cont [2/4] (short) (narrow) %v501_v46, 8  ;;  %v505_v51 = vadd.f32 %v501_v46, %v968_v62 }
 0x144   :  { %v472_v53 = vadd.f32 %v468_v49, %v388_v50  ;;  %v509_v54 = vmul.f32 0.5, %v505_v51 }
 0x146   :  { %v480_v55 = vadd.f32 %v476_v52, %v472_v53  ;;  %513 = vxpose.xlu1.b32.cont [2/4] (short) (narrow) %v509_v54, 8 }
 0x147   :  { %v498_v56 = vld [vmem:[#allocation3 + $0x10] sm:$0xff] }
 0x148   :  { %484 = vst.msk [vmem:[#allocation3 + $0x18] sm:$0xff] %vm41_vm2, %v480_v55  ;;  %v502_v57 = vmul.f32 0.00390625, %v498_v56 }
 0x14a   :  { %556 = vxpose.xlu2.b32.cont [3/4] (short) (narrow) %v502_v57, 8  ;;  %v506_v58 = vadd.f32 %v502_v57, %v974_v7 }
 0x14c   :  { %v510_v59 = vmul.f32 0.5, %v506_v58 }
 0x14e   :  { %514 = vxpose.xlu1.b32.cont [3/4] (short) (narrow) %v510_v59, 8 }
 0x14f   :  { %v499_v38 = vld [vmem:[#allocation3 + $0x18] sm:$0xff] }
 0x150   :  { %v503_v60 = vmul.f32 0.00390625, %v499_v38 }
 0x152   :  { %557 = vxpose.xlu2.b32.end [4/4] (short) (narrow) %v503_v60, 8  ;;  %v507_v37 = vadd.f32 %v503_v60, %v980_v16 }
 0x154   :  { %v511_v61 = vmul.f32 0.5, %v507_v37 }
 0x156   :  { %515 = vxpose.xlu1.b32.end [4/4] (short) (narrow) %v511_v61, 8 }
 0x1be   :  { %v626_v62 = vpop.trf.xlu0 }
 0x1bf   :  { %739 = vmatmul.msk.f32.vlgmr.msra.gmra.mxu1 %vm586_vm5, %v626_v62 }
 0x1d3   :  { %v570_v63 = vpop.trf.xlu2 }
 0x1d4   :  { %738 = vmatmul.msk.f32.vlgmr.msra.gmra.mxu0 %vm586_vm5, %v570_v63 }
 0x1e2   :  { %v528_v0 = vpop.trf.xlu1 }
 0x1e3   :  { %545 = vst.msk [vmem:[#allocation6] sm:$0x3] %vm544_vm6, %v528_v0 }
 0x1e4   :  { %693 = dma.vmem_to_hbm [thread:$0]  %s689_s7, 32, %s691_s23, [#allocation7]  }
 0x23c   :  { %v662_v1 = vpop.f32.mrf.mxu1 }
 0x251   :  { %v607_v3 = vpop.f32.mrf.mxu0 }
 0x252   :  { %v663_v4 = vadd.f32 %v662_v1, %v607_v3 }
 0x254   :  { %v669_v5 = vadd.f32 %v751_v2, %v663_v4 }
 0x256   :  { %671 = vst.msk [vmem:[#allocation4] sm:$0x3] %vm670_vm7, %v669_v5 }
 0x257   :  { %682 = dma.vmem_to_hbm [thread:$0]  %s678_s2, 32, %s680_s3, [#allocation5]  }
 0x258   :  { %800 = dma.done.wait [#allocation5], 32  }
 0x259   :  { %801 = vsyncadd [#allocation5], 4294967264 }
 0x25a   :  { %802 = dma.done.wait [#allocation7], 32  }
 0x25b   :  { %803 = vsyncadd [#allocation7], 4294967264 }
 0x25c   :  { %702 = vsyncpa [#allocation5], 1 }
 0x25d   :  { %703 = vsyncpa [#allocation7], 1 }

</bundles_post_ra>
